<compile_context>
chip_gen: v5e
topology: v5e:2x2
jax: 0.10.0
libtpu: 0.0.40
codegen_flags: <defaults>
</compile_context>

<pallas_src>
import functools
import math

import jax
import jax.numpy as jnp
from jax import lax
from jax.experimental import pallas as pl
from jax.experimental.pallas import tpu as pltpu


# ---------------------------------------------------------------------------
# in-kernel helpers
# ---------------------------------------------------------------------------
def _attend_one(qp, kp, vp, head_bias, key_mask, *, n_heads, d_k, d_v, S,
                approx_recip):
    """Grouped attention for ONE batch element, all heads at once.

    qp, kp    : [S, n_heads*d_k] f32 projections (scale folded into Q).
    vp        : [S, n_heads*d_v] f32 projection.
    head_bias : [N, N] f32 additive mask, 0 on the diagonal SxS head blocks,
                -1e30 elsewhere (N = n_heads*S).  Built once in the wrapper.
    key_mask  : [1, S] f32 key-padding mask (masked where == 0) or None.
    Returns [S, n_heads*d_v] f32 context.
    """
    N = n_heads * S

    # Head-stack along sublanes: row h*S + s  <-  lane block h of row s.
    # Slice + concat only (layout-safe); feeds ONE lane-dense matmul instead
    # of n_heads narrow per-head MXU pushes.
    qs = jnp.concatenate([qp[:, h * d_k:(h + 1) * d_k] for h in range(n_heads)], axis=0)
    ks = jnp.concatenate([kp[:, h * d_k:(h + 1) * d_k] for h in range(n_heads)], axis=0)
    vs = jnp.concatenate([vp[:, h * d_v:(h + 1) * d_v] for h in range(n_heads)], axis=0)

    # ONE score matmul for all heads; the diagonal SxS blocks are the real
    # per-head scores, everything else is masked below.  Contract the last
    # axes (no k.T -> no extra transpose of the narrow tile).
    scores = lax.dot_general(qs, ks, (((1,), (1,)), ((), ())),
                             preferred_element_type=jnp.float32)          # [N, N]

    # key (column) padding mask first -- matches PyTorch masked_fill(==0, -1e9)
    if key_mask is not None:
        km = jnp.concatenate([key_mask] * n_heads, axis=1)                # [1, N]
        scores = jnp.where(km == 0.0, jnp.float32(-1e9), scores)
    # then kill the cross-head blocks
    scores = scores + head_bias

    # numerically stable softmax along rows (f32; exp on EUP)
    scores = scores - jnp.max(scores, axis=-1, keepdims=True)
    p = jnp.exp(scores)
    denom = jnp.sum(p, axis=-1, keepdims=True)
    if approx_recip:
        attn = p * pl.reciprocal(denom, approx=True)
    else:
        attn = p / denom

    # ONE context matmul for all heads (off-block attention weights are 0)
    ctx = jnp.dot(attn, vs, preferred_element_type=jnp.float32)           # [N, d_v]

    # back to [s, h*d_v + d] layout (lane concat of per-head row blocks)
    return jnp.concatenate([ctx[h * S:(h + 1) * S, :] for h in range(n_heads)], axis=1)


def _mha_self_kernel(*refs, n_heads, d_k, d_v, S, block_b, has_mask, approx_recip):
    """Self-attention fast path (Q is K is V): one fused QKV projection."""
    if has_mask:
        x_ref, w_ref, b_ref, bias_ref, m_ref, o_ref = refs
    else:
        x_ref, w_ref, b_ref, bias_ref, o_ref = refs
        m_ref = None
    H_qk = n_heads * d_k

    # [block_b*S, D] @ [D, 2*H_qk + H_out]  -- single MXU pass, f32 accumulate.
    proj = jnp.dot(x_ref[...], w_ref[...],
                   preferred_element_type=jnp.float32) + b_ref[...]

    head_bias = bias_ref[...]                      # hoisted out of the loop
    for b in range(block_b):                       # block_b capped small by the wrapper
        r0 = b * S
        ctx = _attend_one(proj[r0:r0 + S, :H_qk],
                          proj[r0:r0 + S, H_qk:2 * H_qk],
                          proj[r0:r0 + S, 2 * H_qk:],
                          head_bias,
                          m_ref[b] if has_mask else None,
                          n_heads=n_heads, d_k=d_k, d_v=d_v, S=S,
                          approx_recip=approx_recip)
        # one contiguous [S, H_out] slab per batch element; lane-dense for real
        # NAML sizes (H_out = n_heads*d_v = 400 >= 128).
        o_ref[pl.ds(b * S, S), :] = ctx.astype(o_ref.dtype)


def _mha_cross_kernel(*refs, n_heads, d_k, d_v, S, block_b, has_mask, approx_recip):
    """General path (distinct Q / K / V): three exact projections."""
    if has_mask:
        (q_ref, k_ref, v_ref, wq_ref, wk_ref, wv_ref,
         bq_ref, bk_ref, bv_ref, bias_ref, m_ref, o_ref) = refs
    else:
        (q_ref, k_ref, v_ref, wq_ref, wk_ref, wv_ref,
         bq_ref, bk_ref, bv_ref, bias_ref, o_ref) = refs
        m_ref = None

    qp = jnp.dot(q_ref[...], wq_ref[...], preferred_element_type=jnp.float32) + bq_ref[...]
    kp = jnp.dot(k_ref[...], wk_ref[...], preferred_element_type=jnp.float32) + bk_ref[...]
    vp = jnp.dot(v_ref[...], wv_ref[...], preferred_element_type=jnp.float32) + bv_ref[...]

    head_bias = bias_ref[...]
    for b in range(block_b):
        r0 = b * S
        ctx = _attend_one(qp[r0:r0 + S], kp[r0:r0 + S], vp[r0:r0 + S],
                          head_bias,
                          m_ref[b] if has_mask else None,
                          n_heads=n_heads, d_k=d_k, d_v=d_v, S=S,
                          approx_recip=approx_recip)
        o_ref[pl.ds(b * S, S), :] = ctx.astype(o_ref.dtype)


# ---------------------------------------------------------------------------
# wrapper-side sizing helpers
# ---------------------------------------------------------------------------
def _vmem_estimate(block_b, S, D, n_heads, d_k, d_v, n_seq_inputs, in_bytes,
                   out_bytes, has_mask):
    """Rough per-step VMEM footprint: pipeline buffers + live intermediates."""
    rows = block_b * S
    H_qk, H_out = n_heads * d_k, n_heads * d_v
    H_tot = 2 * H_qk + H_out
    N = n_heads * S
    dbl = 2  # double-buffered pipeline blocks
    io = dbl * rows * (n_seq_inputs * D * in_bytes + H_out * out_bytes)
    wts = dbl * (D * H_tot * in_bytes + H_tot * 4 + N * N * 4)
    if has_mask:
        io += dbl * block_b * S * 4
    live = (rows * H_tot * 4              # f32 projection(s)
            + 3 * N * max(d_k, d_v) * 4   # head-stacked q/k/v
            + 2 * N * N * 4               # scores + exp(scores)
            + S * H_out * 4)              # one context slab
    return io + wts + live


def _pick_block_b(B, S, D, n_heads, d_k, d_v, *, n_seq_inputs, in_bytes,
                  out_bytes, has_mask, cap=8, target_rows=256,
                  vmem_budget=24 << 20, min_grid_steps=2):
    """Batch elements per grid step.

    Goals: divisor of B with 8-aligned block rows (BlockSpec (8,128) rule),
    capped small (bounded static unroll / vreg live ranges), VMEM estimate
    under budget (v7x has 64 MiB physical), and >= min_grid_steps grid steps
    when possible so the "parallel" axis can feed both v7x TensorCores (on
    1-TC v5e/v6e the extra step only costs ~0.35us of pipeline overhead).
    """
    def fits(d):
        return _vmem_estimate(d, S, D, n_heads, d_k, d_v, n_seq_inputs,
                              in_bytes, out_bytes, has_mask) <= vmem_budget

    valid = [d for d in range(1, B + 1)
             if B % d == 0 and ((d * S) % 8 == 0 or d == B)]
    good = [d for d in valid if d <= cap and d * S <= target_rows and fits(d)]
    bb = max(good) if good else min(valid)
    if B // bb < min_grid_steps:
        smaller = [d for d in valid if d < bb and B // d >= min_grid_steps and fits(d)]
        if smaller:
            bb = max(smaller)
    return bb


# ---------------------------------------------------------------------------
# public wrapper
# ---------------------------------------------------------------------------
def multi_head_attention(Q, K, V, params, *, n_heads, d_k, d_v,
                         attn_mask=None, block_b=None, compute_dtype=None,
                         approx_recip=True):
    """Forward pass of the NAML MultiHeadAttention module.

    Q, K, V: [B, S, d_model].  attn_mask: optional [B, S] key-padding mask
    (positions where mask == 0 get -1e9 before softmax, like the PyTorch
    masked_fill).  Returns [B, S, n_heads*d_v].
    """
    B, S, D = Q.shape
    # TODO(synk): K/V with a sequence length different from Q are not supported
    # (the NAML module always calls with equal lengths).
    assert K.shape == Q.shape and V.shape == Q.shape
    H_qk, H_out = n_heads * d_k, n_heads * d_v
    N = n_heads * S
    out_dtype = Q.dtype
    self_attn = (Q is K) and (K is V)
    has_mask = attn_mask is not None
    cd = compute_dtype if compute_dtype is not None else Q.dtype
    in_bytes = jnp.dtype(cd).itemsize
    out_bytes = jnp.dtype(out_dtype).itemsize
    n_seq_inputs = 1 if self_attn else 3

    if block_b is None:
        block_b = _pick_block_b(B, S, D, n_heads, d_k, d_v,
                                n_seq_inputs=n_seq_inputs, in_bytes=in_bytes,
                                out_bytes=out_bytes, has_mask=has_mask)
    assert B % block_b == 0
    assert (block_b * S) % 8 == 0 or block_b == B, "block rows must be 8-aligned"

    rows_blk = block_b * S
    grid = (B // block_b,)
    scale = 1.0 / math.sqrt(d_k)

    # Additive cross-head mask for the grouped (block-diagonal) score tile:
    # built once here (plain JAX), DMA'd once (constant index map).
    hid = jnp.repeat(jnp.arange(n_heads, dtype=jnp.int32), S)
    head_bias = jnp.where(hid[:, None] == hid[None, :], 0.0, -1e30).astype(jnp.float32)

    seq_spec = pl.BlockSpec((rows_blk, D), lambda i: (i, 0))
    out_spec = pl.BlockSpec((rows_blk, H_out), lambda i: (i, 0))

    def full2d(shape):
        return pl.BlockSpec(shape, lambda i: (0, 0))

    mask_args, mask_specs = (), ()
    if has_mask:
        assert attn_mask.shape == (B, S)
        mask_args = (attn_mask.reshape(B, 1, S).astype(jnp.float32),)
        mask_specs = (pl.BlockSpec((block_b, 1, S), lambda i: (i, 0, 0)),)

    common = dict(n_heads=n_heads, d_k=d_k, d_v=d_v, S=S, block_b=block_b,
                  has_mask=has_mask, approx_recip=approx_recip)

    if self_attn:
        # NAML fast path: one packed projection weight, 1/3 the sequence DMA.
        H_tot = 2 * H_qk + H_out
        wqkv = jnp.concatenate([params["wq"] * scale, params["wk"], params["wv"]],
                               axis=1).astype(cd)
        bqkv = jnp.concatenate([params["bq"] * scale, params["bk"], params["bv"]],
                               axis=1).astype(jnp.float32)
        kernel = functools.partial(_mha_self_kernel, **common)
        in_specs = [seq_spec, full2d((D, H_tot)), full2d((1, H_tot)),
                    full2d((N, N)), *mask_specs]
        args = (Q.reshape(B * S, D).astype(cd), wqkv, bqkv, head_bias, *mask_args)
    else:
        kernel = functools.partial(_mha_cross_kernel, **common)
        in_specs = [seq_spec, seq_spec, seq_spec,
                    full2d((D, H_qk)), full2d((D, H_qk)), full2d((D, H_out)),
                    full2d((1, H_qk)), full2d((1, H_qk)), full2d((1, H_out)),
                    full2d((N, N)), *mask_specs]
        args = (Q.reshape(B * S, D).astype(cd),
                K.reshape(B * S, D).astype(cd),
                V.reshape(B * S, D).astype(cd),
                (params["wq"] * scale).astype(cd),
                params["wk"].astype(cd),
                params["wv"].astype(cd),
                (params["bq"] * scale).astype(jnp.float32),
                params["bk"].astype(jnp.float32),
                params["bv"].astype(jnp.float32),
                head_bias, *mask_args)

    est = _vmem_estimate(block_b, S, D, n_heads, d_k, d_v, n_seq_inputs,
                         in_bytes, out_bytes, has_mask)
    vmem_limit = None
    if 2 * est > (32 << 20):                       # raise scoped limit only if needed,
        vmem_limit = int(min(56 << 20, 2 * est))   # with headroom under v7x's 64 MiB

    out2d = pl.pallas_call(
        kernel,
        out_shape=jax.ShapeDtypeStruct((B * S, H_out), out_dtype),
        grid_spec=pltpu.PrefetchScalarGridSpec(
            num_scalar_prefetch=0, grid=grid,
            in_specs=in_specs, out_specs=out_spec),
        compiler_params=pltpu.CompilerParams(
            dimension_semantics=("parallel",),
            vmem_limit_bytes=vmem_limit),
    )(*args)
    return out2d.reshape(B, S, H_out)


# ---------------------------------------------------------------------------
# pure-JAX reference + parameter init (mirrors the PyTorch module)
# ---------------------------------------------------------------------------
def reference_mha(Q, K, V, params, *, n_heads, d_k, d_v, attn_mask=None):
    B, S, D = Q.shape
    qp = Q @ params["wq"] + params["bq"]
    kp = K @ params["wk"] + params["bk"]
    vp = V @ params["wv"] + params["bv"]
    q_s = qp.reshape(B, S, n_heads, d_k).transpose(0, 2, 1, 3)
    k_s = kp.reshape(B, S, n_heads, d_k).transpose(0, 2, 1, 3)
    v_s = vp.reshape(B, S, n_heads, d_v).transpose(0, 2, 1, 3)
    scores = jnp.einsum("bhqd,bhkd->bhqk", q_s, k_s) / math.sqrt(d_k)
    if attn_mask is not None:
        scores = jnp.where((attn_mask == 0)[:, None, None, :], -1e9, scores)
    attn = jax.nn.softmax(scores, axis=-1)
    ctx = jnp.einsum("bhqk,bhkd->bhqd", attn, v_s)
    return ctx.transpose(0, 2, 1, 3).reshape(B, S, n_heads * d_v)


def xavier_uniform(key, shape):
    fan_in, fan_out = shape
    limit = math.sqrt(6.0 / (fan_in + fan_out))
    return jax.random.uniform(key, shape, jnp.float32, -limit, limit)


def init_params(key, d_model, n_heads, d_k, d_v):
    ks = jax.random.split(key, 6)
    bound = 1.0 / math.sqrt(d_model)  # nn.Linear default bias init
    return {
        "wq": xavier_uniform(ks[0], (d_model, n_heads * d_k)),
        "wk": xavier_uniform(ks[1], (d_model, n_heads * d_k)),
        "wv": xavier_uniform(ks[2], (d_model, n_heads * d_v)),
        "bq": jax.random.uniform(ks[3], (1, n_heads * d_k), jnp.float32, -bound, bound),
        "bk": jax.random.uniform(ks[4], (1, n_heads * d_k), jnp.float32, -bound, bound),
        "bv": jax.random.uniform(ks[5], (1, n_heads * d_v), jnp.float32, -bound, bound),
    }


if __name__ == "__main__":
    # Small shapes consistent with the module's forward: Q/K/V are [B, S, d_model]
    B, S, D = 2, 8, 32
    n_heads, d_k, d_v = 4, 8, 8

    root = jax.random.PRNGKey(0)
    kx, kq, kk, kv, kp = jax.random.split(root, 5)
    X = jax.random.normal(kx, (B, S, D), jnp.float32)   # self-attention input
    Q = jax.random.normal(kq, (B, S, D), jnp.float32)
    K = jax.random.normal(kk, (B, S, D), jnp.float32)
    V = jax.random.normal(kv, (B, S, D), jnp.float32)
    params = init_params(kp, D, n_heads, d_k, d_v)
    hp = dict(n_heads=n_heads, d_k=d_k, d_v=d_v)

    # --- self-attention fast path (the NAML usage: Q is K is V) -------------
    out = jax.block_until_ready(multi_head_attention(X, X, X, params, **hp))
    ref = reference_mha(X, X, X, params, **hp)
    assert out.shape == (B, S, n_heads * d_v)
    # tolerance loosened slightly because of the EUP approx reciprocal
    assert jnp.allclose(out, ref, atol=5e-3, rtol=5e-3), "self-attn mismatch"

    # --- general path (distinct Q / K / V) -----------------------------------
    out_c = jax.block_until_ready(multi_head_attention(Q, K, V, params, **hp))
    ref_c = reference_mha(Q, K, V, params, **hp)
    assert jnp.allclose(out_c, ref_c, atol=5e-3, rtol=5e-3), "cross-attn mismatch"

    # --- key-padding mask path (PyTorch masked_fill(mask == 0, -1e9)) -------
    attn_mask = jnp.ones((B, S), jnp.float32).at[1, S - 2:].set(0.0)
    out_m = jax.block_until_ready(
        multi_head_attention(X, X, X, params, attn_mask=attn_mask, **hp))
    ref_m = reference_mha(X, X, X, params, attn_mask=attn_mask, **hp)
    assert jnp.allclose(out_m, ref_m, atol=5e-3, rtol=5e-3), "masked path mismatch"

    # --- bf16 matmul-operand path (halves input/weight DMA; f32 accum) ------
    out_bf = jax.block_until_ready(
        multi_head_attention(X, X, X, params, compute_dtype=jnp.bfloat16, **hp))
    assert jnp.max(jnp.abs(out_bf - ref)) < 0.1, "bf16 path mismatch"

    print("KERNEL_OK")
</pallas_src>

<mosaic_0001>
module attributes {stable_mosaic.version = 11 : i64} {
  func.func @_mha_self_kernel(%arg0: i32, %arg1: memref<8x32xf32, #tpu.memory_space<vmem>>, %arg2: memref<32x96xf32, #tpu.memory_space<vmem>>, %arg3: memref<1x96xf32, #tpu.memory_space<vmem>>, %arg4: memref<32x32xf32, #tpu.memory_space<vmem>>, %arg5: memref<8x32xf32, #tpu.memory_space<vmem>>) attributes {dimension_semantics = [#tpu.dimension_semantics<parallel>], iteration_bounds = array<i64: 2>, scalar_prefetch = 0 : i64, scratch_operands = 0 : i64, tpu.core_type = #tpu.core_type<tc>, window_params = [{transform_indices = @transform_0, window_bounds = array<i64: 8, 32>}, {pipeline_mode = #tpu.pipeline_mode<synchronous>, transform_indices = @transform_1, window_bounds = array<i64: 32, 96>}, {pipeline_mode = #tpu.pipeline_mode<synchronous>, transform_indices = @transform_2, window_bounds = array<i64: 1, 96>}, {pipeline_mode = #tpu.pipeline_mode<synchronous>, transform_indices = @transform_3, window_bounds = array<i64: 32, 32>}, {transform_indices = @transform_4, window_bounds = array<i64: 8, 32>}]} {
    %c0 = arith.constant 0 : index
    %c0_0 = arith.constant 0 : index
    %0 = vector.load %arg1[%c0, %c0_0] : memref<8x32xf32, #tpu.memory_space<vmem>>, vector<8x32xf32>
    %c0_1 = arith.constant 0 : index
    %c0_2 = arith.constant 0 : index
    %1 = vector.load %arg2[%c0_1, %c0_2] : memref<32x96xf32, #tpu.memory_space<vmem>>, vector<32x96xf32>
    %cst = arith.constant dense<0.000000e+00> : vector<8x96xf32>
    %2 = tpu.matmul %0, %1, %cst {dimension_numbers = #tpu.dot_dimension_numbers<[1], [0], [0], [1], [0, 0, 1, 1], [], []>} : vector<8x32xf32>, vector<32x96xf32>, vector<8x96xf32> -> vector<8x96xf32>
    %c0_3 = arith.constant 0 : index
    %c0_4 = arith.constant 0 : index
    %3 = vector.load %arg3[%c0_3, %c0_4] : memref<1x96xf32, #tpu.memory_space<vmem>>, vector<1x96xf32>
    %4 = vector.broadcast %3 : vector<1x96xf32> to vector<8x96xf32>
    %5 = arith.addf %2, %4 : vector<8x96xf32>
    %c0_5 = arith.constant 0 : index
    %c0_6 = arith.constant 0 : index
    %6 = vector.load %arg4[%c0_5, %c0_6] : memref<32x32xf32, #tpu.memory_space<vmem>>, vector<32x32xf32>
    %7 = vector.extract_strided_slice %5 {offsets = [0, 0], sizes = [8, 32], strides = [1, 1]} : vector<8x96xf32> to vector<8x32xf32>
    %8 = vector.extract_strided_slice %5 {offsets = [0, 32], sizes = [8, 32], strides = [1, 1]} : vector<8x96xf32> to vector<8x32xf32>
    %9 = vector.extract_strided_slice %5 {offsets = [0, 64], sizes = [8, 32], strides = [1, 1]} : vector<8x96xf32> to vector<8x32xf32>
    %10 = vector.extract_strided_slice %7 {offsets = [0, 0], sizes = [8, 8], strides = [1, 1]} : vector<8x32xf32> to vector<8x8xf32>
    %11 = vector.extract_strided_slice %7 {offsets = [0, 8], sizes = [8, 8], strides = [1, 1]} : vector<8x32xf32> to vector<8x8xf32>
    %12 = vector.extract_strided_slice %7 {offsets = [0, 16], sizes = [8, 8], strides = [1, 1]} : vector<8x32xf32> to vector<8x8xf32>
    %13 = vector.extract_strided_slice %7 {offsets = [0, 24], sizes = [8, 8], strides = [1, 1]} : vector<8x32xf32> to vector<8x8xf32>
    %14 = tpu.concatenate %10, %11, %12, %13 in 0 : vector<8x8xf32>, vector<8x8xf32>, vector<8x8xf32>, vector<8x8xf32> -> vector<32x8xf32>
    %15 = vector.extract_strided_slice %8 {offsets = [0, 0], sizes = [8, 8], strides = [1, 1]} : vector<8x32xf32> to vector<8x8xf32>
    %16 = vector.extract_strided_slice %8 {offsets = [0, 8], sizes = [8, 8], strides = [1, 1]} : vector<8x32xf32> to vector<8x8xf32>
    %17 = vector.extract_strided_slice %8 {offsets = [0, 16], sizes = [8, 8], strides = [1, 1]} : vector<8x32xf32> to vector<8x8xf32>
    %18 = vector.extract_strided_slice %8 {offsets = [0, 24], sizes = [8, 8], strides = [1, 1]} : vector<8x32xf32> to vector<8x8xf32>
    %19 = tpu.concatenate %15, %16, %17, %18 in 0 : vector<8x8xf32>, vector<8x8xf32>, vector<8x8xf32>, vector<8x8xf32> -> vector<32x8xf32>
    %20 = vector.extract_strided_slice %9 {offsets = [0, 0], sizes = [8, 8], strides = [1, 1]} : vector<8x32xf32> to vector<8x8xf32>
    %21 = vector.extract_strided_slice %9 {offsets = [0, 8], sizes = [8, 8], strides = [1, 1]} : vector<8x32xf32> to vector<8x8xf32>
    %22 = vector.extract_strided_slice %9 {offsets = [0, 16], sizes = [8, 8], strides = [1, 1]} : vector<8x32xf32> to vector<8x8xf32>
    %23 = vector.extract_strided_slice %9 {offsets = [0, 24], sizes = [8, 8], strides = [1, 1]} : vector<8x32xf32> to vector<8x8xf32>
    %24 = tpu.concatenate %20, %21, %22, %23 in 0 : vector<8x8xf32>, vector<8x8xf32>, vector<8x8xf32>, vector<8x8xf32> -> vector<32x8xf32>
    %cst_7 = arith.constant dense<0.000000e+00> : vector<32x32xf32>
    %25 = tpu.matmul %14, %19, %cst_7 {dimension_numbers = #tpu.dot_dimension_numbers<[1], [1], [0], [0], [0, 0, 1, 0], [], []>} : vector<32x8xf32>, vector<32x8xf32>, vector<32x32xf32> -> vector<32x32xf32>
    %26 = arith.addf %25, %6 : vector<32x32xf32>
    %cst_8 = arith.constant dense<0xFF800000> : vector<32xf32>
    %27 = vector.multi_reduction <maximumf>, %26, %cst_8 [1] : vector<32x32xf32> to vector<32xf32>
    %28 = vector.shape_cast %27 : vector<32xf32> to vector<32x1xf32>
    %29 = vector.broadcast %28 : vector<32x1xf32> to vector<32x32xf32>
    %30 = arith.subf %26, %29 : vector<32x32xf32>
    %31 = math.exp %30 : vector<32x32xf32>
    %cst_9 = arith.constant dense<0.000000e+00> : vector<32xf32>
    %32 = vector.multi_reduction <add>, %31, %cst_9 [1] : vector<32x32xf32> to vector<32xf32>
    %33 = vector.shape_cast %32 : vector<32xf32> to vector<32x1xf32>
    %34 = tpu.reciprocal %33 {approx = true} : vector<32x1xf32> -> vector<32x1xf32>
    %35 = vector.broadcast %34 : vector<32x1xf32> to vector<32x32xf32>
    %36 = arith.mulf %31, %35 : vector<32x32xf32>
    %cst_10 = arith.constant dense<0.000000e+00> : vector<32x8xf32>
    %37 = tpu.matmul %36, %24, %cst_10 {dimension_numbers = #tpu.dot_dimension_numbers<[1], [0], [0], [1], [0, 0, 1, 1], [], []>} : vector<32x32xf32>, vector<32x8xf32>, vector<32x8xf32> -> vector<32x8xf32>
    %38 = vector.extract_strided_slice %37 {offsets = [0, 0], sizes = [8, 8], strides = [1, 1]} : vector<32x8xf32> to vector<8x8xf32>
    %39 = vector.extract_strided_slice %37 {offsets = [8, 0], sizes = [8, 8], strides = [1, 1]} : vector<32x8xf32> to vector<8x8xf32>
    %40 = vector.extract_strided_slice %37 {offsets = [16, 0], sizes = [8, 8], strides = [1, 1]} : vector<32x8xf32> to vector<8x8xf32>
    %41 = vector.extract_strided_slice %37 {offsets = [24, 0], sizes = [8, 8], strides = [1, 1]} : vector<32x8xf32> to vector<8x8xf32>
    %42 = tpu.concatenate %38, %39, %40, %41 in 1 : vector<8x8xf32>, vector<8x8xf32>, vector<8x8xf32>, vector<8x8xf32> -> vector<8x32xf32>
    %c0_11 = arith.constant 0 : index
    %c0_12 = arith.constant 0 : index
    %43 = vector.load %arg5[%c0_11, %c0_12] : memref<8x32xf32, #tpu.memory_space<vmem>>, vector<8x32xf32>
    tpu.vector_store %arg5[%c0_11, %c0_12], %42 {strides = array<i32>} : memref<8x32xf32, #tpu.memory_space<vmem>>, vector<8x32xf32>,
    return
  }
  func.func @transform_0(%arg0: i32) -> (i32, i32) {
    %c0_i32 = arith.constant 0 : i32
    %c0_i32_0 = arith.constant 0 : i32
    return %arg0, %c0_i32 : i32, i32
  }
  func.func @transform_1(%arg0: i32) -> (i32, i32) {
    %c0_i32 = arith.constant 0 : i32
    %c0_i32_0 = arith.constant 0 : i32
    %c0_i32_1 = arith.constant 0 : i32
    return %c0_i32, %c0_i32_0 : i32, i32
  }
  func.func @transform_2(%arg0: i32) -> (i32, i32) {
    %c0_i32 = arith.constant 0 : i32
    %c0_i32_0 = arith.constant 0 : i32
    %c0_i32_1 = arith.constant 0 : i32
    return %c0_i32, %c0_i32_0 : i32, i32
  }
  func.func @transform_3(%arg0: i32) -> (i32, i32) {
    %c0_i32 = arith.constant 0 : i32
    %c0_i32_0 = arith.constant 0 : i32
    %c0_i32_1 = arith.constant 0 : i32
    return %c0_i32, %c0_i32_0 : i32, i32
  }
  func.func @transform_4(%arg0: i32) -> (i32, i32) {
    %c0_i32 = arith.constant 0 : i32
    %c0_i32_0 = arith.constant 0 : i32
    return %arg0, %c0_i32 : i32, i32
  }
}

</mosaic_0001>

<bundles_post_ra>
// kernel: tpu_custom_call.1
= control target key start
LH: loop header
LB: loop body
LE: loop exit
PB: predicated region body
PF: predicated region fallthrough
CT: control target
= control target key end

     0   :  { %9 = vsyncpa [#allocation3], 0  ;;  %s1085_s0 = inlined_call_operand.hbm [shape: f32[16,32], index: 0, kind: input, shape index: {}]   ;;  %s1086_s1 = inlined_call_operand.hbm [shape: f32[32,96], index: 1, kind: input, shape index: {}]   ;;  %s1087_s2 = inlined_call_operand.vmem [shape: f32[1,96], index: 2, kind: input, shape index: {}]   ;;  %s1088_s3 = inlined_call_operand.hbm [shape: f32[32,32], index: 3, kind: input, shape index: {}]   ;;  %s1089_s4 = inlined_call_operand.hbm [shape: f32[16,32], index: 4, kind: output, shape index: {}]  }
   0x1   :  { %11 = vsyncpa [#allocation3 + $0x1], 0 }
   0x2   :  { %12 = vsyncpa [#allocation6], 0 }
   0x3   :  { %13 = vsyncpa [#allocation4], 0 }
   0x4   :  { %15 = vsyncpa [#allocation4 + $0x1], 0  ;;  %s906_s15 = smov 0   ;;  %s908_s16 = smov 0  }
   0x5   :  { %s910_s17 = smov 0   ;;  %s912_s18 = smov 0  }
   0x6 LB: > { %s152_s21 = sshll.u32 %s1086_s1, 4  ;;  %s930_s22 = sadd.s32 4294967295, %s867_s18   ;;  %s867_s18 = sphi %s912_s18, %s1100_s18   ;;  %s863_s17 = sphi %s910_s17, %s1099_s17   ;;  %s859_s16 = sphi %s908_s16, %s1098_s16   ;;  %s855_s15 = sphi %s906_s15, %s1097_s15   ;;  %s153_s21 = int_to_ptr.hbm [resolvable:$true] %s152_s21 }
   0x7   : > { %p567_p0 = scmp.ge.s32.totalorder %s867_s18, 1  ;;  %p42_p1 = scmp.eq.s32.totalorder %s930_s22, 0 }
   0x8   : > { %p141_p2 = scmp.lt.s32.totalorder %s867_s18, 3  ;;  %s869_s24 = smov [#allocation5]  }
   0x9   : > { %s154_s25 = sshll.u32 %s869_s24, 4  ;;  %s169_s28 = sshll.u32 %s1088_s3, 4  ;;  %s155_s25 = int_to_ptr.vmem [resolvable:$true] %s154_s25  ;;  %s170_s28 = int_to_ptr.hbm [resolvable:$true] %s169_s28 }
   0xa   : > { %p935_p3 = pnand %p567_p0, %p141_p2  ;;  %s870_s29 = smov [#allocation7]  }
   0xb   : > { %s171_s30 = sshll.u32 %s870_s29, 4  ;;  %s871_s5 = smov 128   ;;  %s172_s30 = int_to_ptr.vmem [resolvable:$true] %s171_s30 }
   0xc   : > { %p615_p4 = pneg %p935_p3  ;;  %s872_s6 = smov 8  }
   0xd   : > { %s566_s7 = sadd.s32 4294967294, %s867_s18   ;;  %s949_s8 = sadd.s32 1, %s867_s18  }
   0xe   : > { %p616_p6 = pnand %p615_p4, %p42_p1  ;;  %s25_s9 = ssub.s32 %s867_s18, %s949_s8 }
   0xf   : > { %s28_s10 = sadd.s32 1, %s863_s17  ;;  %p26_p7 = scmp.eq.s32.totalorder %s25_s9, 0 }
  0x10   : > { %618 = dma.hbm_to_vmem [thread:$0]  (!%p616_p6), %s153_s21, 512, %s155_s25, [#allocation6], %s871_s5, %s871_s5, %s872_s6  }
  0x11   : > { %621 = dma.hbm_to_vmem [thread:$0]  (!%p616_p6), %s170_s28, 512, %s172_s30, [#allocation6], %s871_s5, %s871_s5, %s872_s6  }
  0x12   : > { %p35_p8 = scmp.ne.s32.totalorder %s863_s17, %s859_s16  ;;  %p36_p9 = scmp.eq.s32.totalorder %s867_s18, 0 }
  0x13   : > { %p41_p10 = scmp.ne.s32.totalorder %s859_s16, %s855_s15  ;;  %p128_p13 = scmp.eq.s32.totalorder %s930_s22, 1 }
  0x14   : > { %s960_s11 = scalar_select %p26_p7, %s863_s17, %s28_s10  }
  0x15   : > { %p962_p11 = por %p36_p9, %p35_p8  ;;  %p968_p12 = por %p42_p1, %p41_p10 }
  0x16   : > { %p134_p0 = scmp.eq.s32.totalorder %s566_s7, 1  ;;  %p632_p2 = scmp.lt.s32.totalorder %s867_s18, 2 }
  0x17   : > { %s185_s14 = sand.u32 1, %s863_s17   ;;  %p975_p4 = por %p128_p13, %p35_p8 }
  0x18   : > { %p979_p6 = por %p134_p0, %p41_p10  ;;  %s571_s21 = sshll.u32 %s185_s14, 3 }
  0x19   : > { %s572_s24 = sshll.u32 %s867_s18, 3  ;;  %s189_s28 = scalar_lea.vmem [#allocation2], %s571_s21 }
  0x1a   : > { %s193_s27 = scalar_lea.hbm %s1085_s0, %s572_s24  ;;  %s197_s29 = sshll.u32 %s189_s28, 4  ;;  %s198_s29 = int_to_ptr.vmem [resolvable:$true] %s197_s29 }
  0x1b   : > { %s195_s30 = sshll.u32 %s193_s27, 4  ;;  %p989_p7 = pnand %p632_p2, %p962_p11  ;;  %s196_s30 = int_to_ptr.hbm [resolvable:$true] %s195_s30 }
  0x1c   : > { %s186_s6 = scalar_lea.sflag [#allocation3], %s185_s14  ;;  %s767_s7 = sshra.s32 %s196_s30, 4  ;;  %s768_s7 = int_to_ptr.hbm [resolvable:$true] %s767_s7 }
  0x1d   : > { %s769_s9 = scalar_lea.hbm %s768_s7, 8  ;;  %p771_p9 = pneg %p989_p7 }
  0x1e   : > { %p770_p8 = scmp.ne.s32.totalorder %s768_s7, %s769_s9  ;;  %s774_s24 = scalar_lea.hbm %s1085_s0, 16 }
  0x1f   : > { %p775_p11 = scmp.lt.s32.totalorder %s768_s7, %s1085_s0  ;;  %p776_p0 = scmp.lt.s32.totalorder %s774_s24, %s769_s9 }
  0x20   : > { %p772_p10 = pnand %p771_p9, %p770_p8 }
  0x21   : > { %p777_p2 = por %p776_p0, %p775_p11 }
  0x22   : > { %p773_p13 = pneg %p772_p10 }
  0x24   : > { %p778_p5 = pnand %p777_p2, %p773_p13 }
  0x26   : > { %781 = shalt.err (!%p778_p5)
}
  0x27   : > { %625 = dma.hbm_to_vmem [thread:$0]  (!%p989_p7), %s196_s30, 128, %s198_s29, %s186_s6  }
  0x28   : > { %206 = sbr.rel (%p935_p3) target bundleno = 1087 (0x43f), region = 36  ;;  %s1006_s14 = sand.u32 (!%p935_p3), 1, %s859_s16  }
  0x29   : > { %s574_s26 = sshll.u32 (!%p935_p3), %s1006_s14, 3  ;;  %s209_s27 = scalar_lea.sflag (!%p935_p3), [#allocation3], %s1006_s14 }
  0x2a   : > { %s212_s28 = scalar_lea.vmem (!%p935_p3), [#allocation2], %s574_s26 }
  0x2d   : > { %842 = dma.done.wait (%p968_p12), %s209_s27, 128  }
  0x2e   : > { %844 = vsyncadd (%p968_p12), %s209_s27, 4294967168 }
  0x2f   : > { %846 = dma.done.wait (%p42_p1), [#allocation6], 1024  }
  0x30   : > { %848 = vsyncadd (%p42_p1), [#allocation6], 4294966272  ;;  %v252_v0 = vld [vmem:[#allocation5 + $0x18] sm:$0xff]  ;;  %v251_v1 = vld [vmem:[#allocation5 + $0x10] sm:$0xff]  ;;  %vm257_vm0 = vcmask 261120   ;;  %s873_s29 = smov 120  }
  0x31   : > { %273 = vmatpush.msra.mxu0 %v252_v0  ;;  %v250_v2 = vld [vmem:[#allocation5 + $0x8] sm:$0xff]  ;;  %v249_v3 = vld [vmem:[#allocation5] sm:$0xff]  ;;  %v248_v4 = vld [vmem:[%s212_s28] sm:$0xff]  ;;  %s874_s30 = smov 104   ;;  %s875_s5 = smov 112   ;;  %vm300_vm1 = vcmask 64512  }
  0x32   : > { %v690_v5 = vld [vmem:[%s1087_s2] ss:$0 sm:$0xff]  ;;  %s876_s6 = smov 96   ;;  %v282_v18 = vld [vmem:[#allocation7 + $0x8] sm:$0xff]  ;;  %v281_v23 = vld [vmem:[#allocation7] sm:$0xff]  ;;  %s877_s7 = smov 64  }
  0x33   : > { %274 = vmatpush.msra.mxu0 %v251_v1  ;;  %v283_v16 = vld [vmem:[#allocation7 + $0x10] sm:$0xff]  ;;  %v284_v25 = vld [vmem:[#allocation7 + $0x18] sm:$0xff]  ;;  %s878_s9 = smov 8   ;;  %s879_s10 = smov 16   ;;  %vm456_vm2 = vcmask 130048   ;;  %vm458_vm3 = vcmask 195584  }
  0x34   : > { %s880_s21 = smov 24   ;;  %s592_s24 = sshll.u32 %s930_s22, 3 }
  0x35   : > { %275 = vmatpush.msra.mxu0 %v250_v2  ;;  %s472_s27 = scalar_lea.hbm %s1089_s4, %s592_s24  ;;  %s247_s28 = scalar_lea.vmem [#allocation8], %s574_s26 }
  0x36   : > { %s474_s23 = sshll.u32 %s247_s28, 4  ;;  %s476_s13 = sshll.u32 %s472_s27, 4  ;;  %s475_s23 = int_to_ptr.vmem [resolvable:$true] %s474_s23  ;;  %s477_s13 = int_to_ptr.hbm [resolvable:$true] %s476_s13 }
  0x37   : > { %276 = vmatpush.msra.mxu0 %v249_v3  ;;  %s462_s22 = scalar_lea.sflag [#allocation4], %s1006_s14 }
  0x38   : > { %578 = vmatmul.msk.f32.vlgmr.msra.gmra.mxu0 %vm257_vm0, %v248_v4 }
  0xb5   : > { %v278_v6 = vpop.f32.mrf.mxu0 }
  0xb6   : > { %v279_v7 = vadd.f32 %v690_v5, %v278_v6 }
  0xb8   : > { %286 = vrot.lane.b32.xlu1 %v279_v7, %s873_s29  ;;  %290 = vrot.lane.b32.xlu0 %v279_v7, %s874_s30  ;;  %s811_s29 = sshra.s32 %s477_s13, 4  ;;  %s812_s29 = int_to_ptr.hbm [resolvable:$true] %s811_s29 }
  0xb9   : > { %s813_s30 = scalar_lea.hbm %s812_s29, 8  ;;  %p818_p12 = scmp.lt.s32.totalorder %s812_s29, %s1089_s4 }
  0xba   : > { %p814_p1 = scmp.ne.s32.totalorder %s812_s29, %s813_s30 }
  0xbc   : > { %p815_p3 = pnand %p814_p1, %p975_p4 }
  0xbe   : > { %p816_p5 = pneg %p815_p3 }
  0xc0   : > { %288 = vrot.lane.b32.xlu0 %v279_v7, %s875_s5 }
  0xc8   : > { %292 = vrot.lane.b32.xlu0 %v279_v7, %s876_s6 }
 0x12a   : > { %v291_v8 = vpop.permute.xlu0 %290  ;;  %v287_v10 = vpop.permute.xlu1 %286 }
 0x12b   : > { %298 = vrot.lane.b32.xlu1 %v291_v8, %s876_s6  ;;  %v685_v32 = vpack.i.bf16 %v279_v7, %v287_v10 }
 0x132   : > { %v289_v9 = vpop.permute.xlu0 %288 }
 0x133   : > { %296 = vrot.lane.b32.xlu2 %v289_v9, %s876_s6  ;;  %v680_v31 = vpack.i.bf16 %v289_v9, %v291_v8 }
 0x13a   : > { %v293_v14 = vpop.permute.xlu0 %292 }
 0x13b   : > { %294 = vrot.lane.b32.xlu2 %v287_v10, %s876_s6  ;;  %s817_s6 = scalar_lea.hbm %s1089_s4, 16 }
 0x13c   : > { %p819_p7 = scmp.lt.s32.totalorder %s817_s6, %s813_s30 }
 0x13e   : > { %p820_p8 = por %p819_p7, %p818_p12 }
 0x140   : > { %p821_p9 = pnand %p820_p8, %p816_p5 }
 0x18d   : > { %v297_v11 = vpop.permute.xlu2 %296 }
 0x195   : > { %v295_v13 = vpop.permute.xlu2 %294 }
 0x19d   : > { %v299_v12 = vpop.permute.xlu1 %298 }
 0x19e   : > { %579 = vmatpush.xpose.msk.msra.mxu1 %vm300_vm1, %v299_v12  ;;  %595 = vmatpush.xpose.msk.msra.mxu3 %vm300_vm1, %v299_v12 }
 0x1a2   : > { %580 = vmatpush.xpose.msk.msra.mxu1 %vm300_vm1, %v297_v11  ;;  %596 = vmatpush.xpose.msk.msra.mxu3 %vm300_vm1, %v297_v11 }
 0x1a6   : > { %581 = vmatpush.xpose.msk.msra.mxu1 %vm300_vm1, %v295_v13  ;;  %597 = vmatpush.xpose.msk.msra.mxu3 %vm300_vm1, %v295_v13 }
 0x1aa   : > { %582 = vmatpush.xpose.msk.msra.mxu1 %vm300_vm1, %v293_v14  ;;  %598 = vmatpush.xpose.msk.msra.mxu3 %vm300_vm1, %v293_v14 }
 0x1ad   : > { %583 = vmatmul.msk.f32.vlgmr.msra.gmra.mxu1 %vm300_vm1, %v279_v7  ;;  %585 = vmatmul.msk.f32.vlgmr.msra.gmra.mxu3 %vm300_vm1, %v289_v9 }
 0x1b5   : > { %584 = vmatmul.msk.f32.gmra.mxu1 %vm300_vm1, %v287_v10  ;;  %586 = vmatmul.msk.f32.gmra.mxu3 %vm300_vm1, %v291_v8 }
 0x22a   : > { %v334_v15 = vpop.f32.mrf.mxu1 }
 0x22b   : > { %v335_v26 = vadd.f32 %v334_v15, %v281_v23 }
 0x22d   : > { %v346_v30 = vsel %vm257_vm0, %v335_v26, -inf }
 0x230   : > { %v340_v17 = vpop.f32.mrf.mxu3 }
 0x231   : > { %v341_v19 = vadd.f32 %v340_v17, %v283_v16 }
 0x232   : > { %v337_v20 = vpop.f32.mrf.mxu1 }
 0x233   : > { %v338_v21 = vadd.f32 %v337_v20, %v282_v18  ;;  %v352_v22 = vsel %vm257_vm0, %v341_v19, -inf }
 0x234   : > { %353 = vmax.xlane.f32.xlu2 %v352_v22 }
 0x235   : > { %v349_v24 = vsel %vm257_vm0, %v338_v21, -inf }
 0x236   : > { %350 = vmax.xlane.f32.xlu1 %v349_v24 }
 0x238   : > { %v343_v27 = vpop.f32.mrf.mxu3 }
 0x239   : > { %v344_v28 = vadd.f32 %v343_v27, %v284_v25 }
 0x23b   : > { %v355_v29 = vsel %vm257_vm0, %v344_v28, -inf }
 0x23c   : > { %356 = vmax.xlane.f32.xlu0 %v355_v29  ;;  %347 = vmax.xlane.f32.xlu2 %v346_v30 }
 0x24f   : > { %681 = vrot.lane.b32.xlu1 %v680_v31, %s877_s7 }
 0x250   : > { %686 = vrot.lane.b32.xlu0 %v685_v32, %s877_s7 }
 0x2a7   : > { %v354_v33 = vpop.xlane.xlu2 %353 }
 0x2a8   : > { %v360_v36 = vsub.f32 %v341_v19, %v354_v33 }
 0x2a9   : > { %v351_v34 = vpop.xlane.xlu1 %350 }
 0x2aa   : > { %v359_v35 = vsub.f32 %v338_v21, %v351_v34  ;;  %v366_v39 = vmul.f32 1.442695, %v360_v36 }
 0x2ac   : > { %v364_v37 = vmul.f32 1.442695, %v359_v35 }
 0x2ae   : > { %691 = vpow2.f32 %v364_v37 }
 0x2af   : > { %v348_v38 = vpop.xlane.xlu2 %347  ;;  %v357_v41 = vpop.xlane.xlu0 %356  ;;  %693 = vpow2.f32 %v366_v39 }
 0x2b0   : > { %v358_v40 = vsub.f32 %v335_v26, %v348_v38  ;;  %v361_v44 = vsub.f32 %v344_v28, %v357_v41 }
 0x2b2   : > { %v362_v42 = vmul.f32 1.442695, %v358_v40  ;;  %v368_v46 = vmul.f32 1.442695, %v361_v44 }
 0x2b4   : > { %v692_v43 = vpop.eup %691  ;;  %695 = vpow2.f32 %v362_v42 }
 0x2b5   : > { %v373_v45 = vsel %vm257_vm0, %v692_v43, 0.0  ;;  %v694_v47 = vpop.eup %693  ;;  %697 = vpow2.f32 %v368_v46 }
 0x2b6   : > { %374 = vadd.xlane.f32.xlu2 %v373_v45  ;;  %v376_v50 = vsel %vm257_vm0, %v694_v47, 0.0 }
 0x2ba   : > { %v696_v48 = vpop.eup %695 }
 0x2bb   : > { %v370_v49 = vsel %vm257_vm0, %v696_v48, 0.0  ;;  %v698_v53 = vpop.eup %697 }
 0x2bc   : > { %371 = vadd.xlane.f32.xlu1 %v370_v49  ;;  %v379_v56 = vsel %vm257_vm0, %v698_v53, 0.0 }
 0x2be   : > { %377 = vadd.xlane.f32.xlu2 %v376_v50 }
 0x2c1   : > { %v682_v51 = vpop.permute.xlu1 %681 }
 0x2c2   : > { %v683_v52 = vunpack.i.l.bf16 %v682_v51  ;;  %v687_v54 = vpop.permute.xlu0 %686  ;;  %v684_v55 = vunpack.i.h.bf16 %v682_v51 }
 0x2c3   : > { %v688_v57 = vunpack.i.l.bf16 %v687_v54  ;;  %v689_v58 = vunpack.i.h.bf16 %v687_v54 }
 0x2c4   : > { %426 = vmatpush.msrb.mxu0 %v683_v52  ;;  %599 = vmatpush.msra.mxu2 %v683_v52 }
 0x2c6   : > { %427 = vmatpush.msrb.mxu0 %v684_v55  ;;  %600 = vmatpush.msra.mxu2 %v684_v55 }
 0x2c7   : > { %380 = vadd.xlane.f32.xlu2 %v379_v56 }
 0x2c8   : > { %428 = vmatpush.msrb.mxu0 %v688_v57  ;;  %601 = vmatpush.msra.mxu2 %v688_v57 }
 0x2ca   : > { %429 = vmatpush.msrb.mxu0 %v689_v58  ;;  %602 = vmatpush.msra.mxu2 %v689_v58 }
 0x329   : > { %v375_v59 = vpop.xlane.xlu2 %374 }
 0x32a   : > { %699 = vrcp.f32 %v375_v59 }
 0x32f   : > { %v372_v61 = vpop.xlane.xlu1 %371 }
 0x330   : > { %v700_v60 = vpop.eup %699  ;;  %701 = vrcp.f32 %v372_v61 }
 0x331   : > { %v378_v62 = vpop.xlane.xlu2 %377  ;;  %v387_v63 = vmul.f32 %v700_v60, %v692_v43 }
 0x332   : > { %703 = vrcp.f32 %v378_v62 }
 0x333   : > { %588 = vmatmul.msk.f32.vlgmr.msra.gmra.mxu2 %vm257_vm0, %v387_v63 }
 0x336   : > { %v702_v0 = vpop.eup %701 }
 0x337   : > { %v386_v2 = vmul.f32 %v702_v0, %v696_v48 }
 0x338   : > { %v704_v1 = vpop.eup %703 }
 0x339   : > { %v388_v3 = vmul.f32 %v704_v1, %v694_v47  ;;  %587 = vmatmul.msk.f32.vlgmr.msrb.gmra.mxu0 %vm257_vm0, %v386_v2 }
 0x33a   : > { %v381_v4 = vpop.xlane.xlu2 %380 }
 0x33b   : > { %705 = vrcp.f32 %v381_v4  ;;  %589 = vmatmul.msk.f32.gmra.mxu2 %vm257_vm0, %v388_v3 }
 0x341   : > { %v706_v5 = vpop.eup %705 }
 0x342   : > { %v389_v6 = vmul.f32 %v706_v5, %v698_v53 }
 0x344   : > { %590 = vmatmul.msk.f32.gmra.mxu2 %vm257_vm0, %v389_v6 }
 0x3b6   : > { %v434_v7 = vpop.f32.mrf.mxu2  ;;  %v431_v11 = vpop.f32.mrf.mxu0 }
 0x3b7   : > { %444 = vrot.lane.b32.xlu0 %v434_v7, %s878_s9 }
 0x3be   : > { %v437_v8 = vpop.f32.mrf.mxu2 }
 0x3bf   : > { %448 = vrot.lane.b32.xlu2 %v437_v8, %s879_s10 }
 0x3c7   : > { %v440_v9 = vpop.f32.mrf.mxu2 }
 0x3c8   : > { %452 = vrot.lane.b32.xlu0 %v440_v9, %s880_s21 }
 0x419   : > { %v449_v13 = vpop.permute.xlu2 %448 }
 0x429   : > { %v445_v10 = vpop.permute.xlu0 %444 }
 0x42a   : > { %v455_v12 = vsel %vm300_vm1, %v431_v11, %v445_v10 }
 0x42b   : > { %v457_v15 = vsel %vm456_vm2, %v455_v12, %v449_v13 }
 0x43a   : > { %v453_v14 = vpop.permute.xlu0 %452 }
 0x43b   : > { %v459_v16 = vsel %vm458_vm3, %v457_v15, %v453_v14 }
 0x43c   : > { %460 = vst.msk [vmem:[%s247_s28] sm:$0xff] %vm257_vm0, %v459_v16 }
 0x43d   : > { %824 = shalt.err (!%p821_p9)
}
 0x43e   : > { %613 = dma.vmem_to_hbm [thread:$0]  (%p975_p4), %s475_s23, 128, %s477_s13, %s462_s22  }
 0x43f PF: > { %s488_s14 = sand.u32 1, %s855_s15   ;;  %p1096_p10 = scmp.ge.s32.totalorder %s867_s18, 2 }
 0x440   : > { %s489_s10 = scalar_lea.sflag [#allocation4], %s488_s14 }
 0x441   : > { %p627_p13 = pnand %p1096_p10, %p979_p6 }
 0x443   : > { %p628_p11 = pneg %p627_p13 }
 0x445   : > { %850 = dma.done.wait (%p628_p11), %s489_s10, 128  }
 0x446   : > { %852 = vsyncadd (%p628_p11), %s489_s10, 4294967168  ;;  %p18_p0 = scmp.ge.s32.totalorder %s949_s8, 4   ;;  %s1097_s15 = smov %s859_s16 }
 0x447   : > { %s1098_s16 = smov %s863_s17  ;;  %s1099_s17 = smov %s960_s11 }
 0x448   : > { %s1100_s18 = smov %s949_s8  ;;  %20 = sbr.rel (!%p18_p0) target bundleno = 6 (0x6), region = 89 }
 0x44d   :  { %495 = vsyncpa [#allocation3], 1 }
 0x44e   :  { %497 = vsyncpa [#allocation3 + $0x1], 1 }
 0x44f   :  { %498 = vsyncpa [#allocation6], 1 }
 0x450   :  { %499 = vsyncpa [#allocation4], 1 }
 0x451   :  { %501 = vsyncpa [#allocation4 + $0x1], 1 }

</bundles_post_ra>
